<compile_context>
chip_gen: v7x
topology: tpu7x:2x2x1
jax: 0.10.0
libtpu: 0.0.40
codegen_flags: <defaults>
</compile_context>

<pallas_src>
import jax
import jax.numpy as jnp
from jax.experimental import pallas as pl
from jax.experimental.pallas import tpu as pltpu


def _round_up(x, m):
    return ((x + m - 1) // m) * m


def _pooler_kernel(x_ref, w_ref, b_ref, o_ref):
    """tanh(x0 @ W_t + b) on one (TB, TN) output tile.

    x_ref: (TB, D)   input dtype (token-0 rows of this batch tile)
    w_ref: (D, TN)   bf16        (resident / per-N-block weight slab)
    b_ref: (1, TN)   f32
    o_ref: (TB, TN)  output dtype
    """
    x0 = x_ref[...].astype(jnp.bfloat16)
    y = jnp.dot(x0, w_ref[...], preferred_element_type=jnp.float32)  # MXU, f32 acc
    y = y + b_ref[...]                                               # f32 bias add
    o_ref[...] = jnp.tanh(y).astype(o_ref.dtype)                     # f32 tanh, cast on store


def prepare_pooler_params(weight, bias):
    """One-time parameter prep (outside the per-call hot path).

    weight: (D_out, D_in) PyTorch nn.Linear layout; bias: (D_out,).
    Returns (w_t, b2d, d_out): w_t (D_in, Dp) bf16 with the output dim zero-padded
    to a multiple of 128 (lane-dense stores), b2d (1, Dp) f32.
    """
    d_out, d_in = weight.shape
    dp = _round_up(d_out, 128)
    w_t = jnp.asarray(weight).T.astype(jnp.bfloat16)      # (D_in, D_out)
    b = jnp.asarray(bias).astype(jnp.float32)
    if dp != d_out:
        w_t = jnp.pad(w_t, ((0, 0), (0, dp - d_out)))
        b = jnp.pad(b, (0, dp - d_out))
    return w_t, b.reshape(1, dp), d_out


def _vmem_capacity_bytes():
    try:
        return int(pltpu.get_tpu_info().vmem_capacity_bytes)
    except Exception:
        return 64 << 20   # v7x per-TC capacity: the smallest of the three generations


def _choose_tiles(B, D, dp, x_bytes, w_bytes, out_bytes, max_tb=1024):
    """Pick (TB, TN) so resident weight + double-buffered x/out tiles fit VMEM."""
    vmem = _vmem_capacity_bytes()
    budget = (vmem * 3) // 4                      # ~25% headroom vs physical capacity

    # N (output-column) tiling: bound the weight block to <= half the budget.
    tn = dp
    if D * tn * w_bytes > budget // 2:
        tn = max(128, (((budget // 2) // (D * w_bytes)) // 128) * 128)
    grid_n = pl.cdiv(dp, tn)

    # Resident footprint: weight/bias single-buffered when their block never
    # changes; double-buffered only when the N axis is actually tiled.
    w_bufs = 1 if grid_n == 1 else 2
    resident = w_bufs * (D * tn * w_bytes + tn * 4)

    # Batch tiling: fill the remaining budget with double-buffered x / out rows.
    per_row = 2 * (D * x_bytes + tn * out_bytes)
    tb = max(16, (budget - resident) // max(per_row, 1))
    tb = min(tb, max_tb)
    if B > 16:
        # Keep >= 2 grid steps over batch: v7x megacore sharding + pipelining.
        tb = min(tb, _round_up(pl.cdiv(B, 2), 16))
    if tb >= B:
        tb = B
    else:
        tb = max(16, (tb // 16) * 16)             # 16 rows = one packed bf16 MXU tile

    # Explicit scoped-VMEM limit from the real tile footprint (+25% + margin).
    footprint = resident + 2 * tb * (D * x_bytes + tn * out_bytes)
    vmem_limit = int(min(vmem, max(32 << 20, footprint * 1.25 + (2 << 20))))
    return tb, tn, grid_n, vmem_limit


def pooler_forward(x, w_t, b2d, d_out, *, out_dtype=None, return_padded=False,
                   max_tb=1024):
    """x: (B, S, D); w_t: (D, Dp) bf16; b2d: (1, Dp) f32. Returns (B, d_out)
    (or the lane-padded (B, Dp) buffer if return_padded=True, so a downstream
    consumer can skip the extra HBM unslice pass)."""
    B, S, D = x.shape
    d_in, dp = w_t.shape
    assert d_in == D and b2d.shape == (1, dp)
    out_dtype = x.dtype if out_dtype is None else out_dtype

    x_bytes = jnp.dtype(x.dtype).itemsize
    w_bytes = jnp.dtype(w_t.dtype).itemsize
    o_bytes = jnp.dtype(out_dtype).itemsize
    TB, TN, grid_n, vmem_limit = _choose_tiles(B, D, dp, x_bytes, w_bytes, o_bytes,
                                               max_tb=max_tb)
    grid_b = pl.cdiv(B, TB)
    # N axis outer (weight slab stays put across the inner batch sweep), batch inner.
    grid = (grid_n, grid_b)

    # x feed: for small d_model the strided token-0 DMA bursts are tiny (< 512 B),
    # so pre-gather a contiguous (B, D) CLS slab in the wrapper; for D >= 128 DMA
    # the token-0 slab straight out of the 3-D activation (seq dim squeezed away).
    if D < 128:
        x_in = x[:, 0]
        x_spec = pl.BlockSpec((TB, D), lambda j, i: (i, 0))
    else:
        x_in = x
        x_spec = pl.BlockSpec((TB, pl.Squeezed(), D), lambda j, i: (i, 0, 0))

    out_spec = pl.BlockSpec((TB, TN), lambda j, i: (i, j))

    def _build(w_kwargs):
        return pl.pallas_call(
            _pooler_kernel,
            out_shape=jax.ShapeDtypeStruct((B, dp), out_dtype),
            grid=grid,
            in_specs=[
                x_spec,
                pl.BlockSpec((D, TN), lambda j, i: (0, j), **w_kwargs),
                pl.BlockSpec((1, TN), lambda j, i: (0, j), **w_kwargs),
            ],
            out_specs=out_spec,
            compiler_params=pltpu.CompilerParams(
                dimension_semantics=("parallel", "parallel"),
                vmem_limit_bytes=vmem_limit,
            ),
        )

    if grid_n == 1:
        # Constant weight/bias blocks: single-buffer them (halves resident VMEM).
        try:
            out_padded = _build(dict(pipeline_mode=pl.Buffered(1)))(x_in, w_t, b2d)
        except Exception:
            # Fallback if this jax build rejects pipeline_mode on a top-level BlockSpec.
            out_padded = _build({})(x_in, w_t, b2d)
    else:
        out_padded = _build({})(x_in, w_t, b2d)

    if return_padded:
        return out_padded
    return out_padded[:, :d_out] if dp != d_out else out_padded


if __name__ == "__main__":
    key = jax.random.PRNGKey(0)
    kx, kw, kx2, kw2 = jax.random.split(key, 4)

    # --- Demo at the module's small shapes (B=2, S=8, d_model=32) ---
    B, S, D = 2, 8, 32
    INIT_RANGE = 1.0
    x = jax.random.normal(kx, (B, S, D), dtype=jnp.float32)
    # Deterministic parameter init mirroring the PyTorch __init__:
    #   weight ~ N(0, INIT_RANGE), bias = 0
    weight = INIT_RANGE * jax.random.normal(kw, (D, D), dtype=jnp.float32)
    bias = jnp.zeros((D,), dtype=jnp.float32)

    # One-time param prep (transpose / bf16 / lane-pad) outside the hot path.
    w_t, b2d, d_out = prepare_pooler_params(weight, bias)
    out = jax.block_until_ready(pooler_forward(x, w_t, b2d, d_out))

    ref = jnp.tanh(x[:, 0] @ weight.T + bias)
    assert out.shape == (B, D)
    # Tolerance widened because MXU inputs are bf16 (accumulation stays f32).
    assert jnp.allclose(out, ref, atol=5e-2, rtol=5e-2), float(
        jnp.max(jnp.abs(out - ref)))

    # --- Secondary check: non-divisible batch tile + strided token-0 DMA path ---
    B2, S2, D2 = 40, 4, 256
    x2 = jax.random.normal(kx2, (B2, S2, D2), dtype=jnp.float32)
    # Scaled init so pre-tanh values are not fully saturated (stricter numeric check).
    weight2 = jax.random.normal(kw2, (D2, D2), dtype=jnp.float32) / jnp.sqrt(D2)
    bias2 = jnp.zeros((D2,), dtype=jnp.float32)
    w_t2, b2d2, d_out2 = prepare_pooler_params(weight2, bias2)
    out2 = jax.block_until_ready(
        pooler_forward(x2, w_t2, b2d2, d_out2, max_tb=32))  # forces grid_b=2, partial tile
    ref2 = jnp.tanh(x2[:, 0] @ weight2.T + bias2)
    assert out2.shape == (B2, D2)
    assert jnp.allclose(out2, ref2, atol=5e-2, rtol=5e-2), float(
        jnp.max(jnp.abs(out2 - ref2)))

    print("KERNEL_OK")
</pallas_src>

<mosaic_0001>
module attributes {stable_mosaic.version = 11 : i64} {
  func.func @_pooler_kernel(%arg0: i32, %arg1: i32, %arg2: memref<2x32xf32, #tpu.memory_space<vmem>>, %arg3: memref<32x128xbf16, #tpu.memory_space<vmem>>, %arg4: memref<1x128xf32, #tpu.memory_space<vmem>>, %arg5: memref<2x128xf32, #tpu.memory_space<vmem>>) attributes {dimension_semantics = [#tpu.dimension_semantics<parallel>, #tpu.dimension_semantics<parallel>], iteration_bounds = array<i64: 1, 1>, scalar_prefetch = 0 : i64, scratch_operands = 0 : i64, tpu.core_type = #tpu.core_type<tc>, window_params = [{transform_indices = @transform_0, window_bounds = array<i64: 2, 32>}, {pipeline_mode = #tpu.pipeline_mode<synchronous>, transform_indices = @transform_1, window_bounds = array<i64: 32, 128>}, {pipeline_mode = #tpu.pipeline_mode<synchronous>, transform_indices = @transform_2, window_bounds = array<i64: 1, 128>}, {transform_indices = @transform_3, window_bounds = array<i64: 2, 128>}]} {
    %c0 = arith.constant 0 : index
    %c0_0 = arith.constant 0 : index
    %0 = vector.load %arg2[%c0, %c0_0] : memref<2x32xf32, #tpu.memory_space<vmem>>, vector<2x32xf32>
    %1 = arith.truncf %0 : vector<2x32xf32> to vector<2x32xbf16>
    %c0_1 = arith.constant 0 : index
    %c0_2 = arith.constant 0 : index
    %2 = vector.load %arg3[%c0_1, %c0_2] : memref<32x128xbf16, #tpu.memory_space<vmem>>, vector<32x128xbf16>
    %cst = arith.constant dense<0.000000e+00> : vector<2x128xf32>
    %3 = tpu.matmul %1, %2, %cst {dimension_numbers = #tpu.dot_dimension_numbers<[1], [0], [0], [1], [0, 0, 1, 1], [], []>} : vector<2x32xbf16>, vector<32x128xbf16>, vector<2x128xf32> -> vector<2x128xf32>
    %c0_3 = arith.constant 0 : index
    %c0_4 = arith.constant 0 : index
    %4 = vector.load %arg4[%c0_3, %c0_4] : memref<1x128xf32, #tpu.memory_space<vmem>>, vector<1x128xf32>
    %5 = vector.broadcast %4 : vector<1x128xf32> to vector<2x128xf32>
    %6 = arith.addf %3, %5 : vector<2x128xf32>
    %7 = math.tanh %6 : vector<2x128xf32>
    %c0_5 = arith.constant 0 : index
    %c0_6 = arith.constant 0 : index
    %8 = vector.load %arg5[%c0_5, %c0_6] : memref<2x128xf32, #tpu.memory_space<vmem>>, vector<2x128xf32>
    tpu.vector_store %arg5[%c0_5, %c0_6], %7 {strides = array<i32>} : memref<2x128xf32, #tpu.memory_space<vmem>>, vector<2x128xf32>,
    return
  }
  func.func @transform_0(%arg0: i32, %arg1: i32) -> (i32, i32) {
    %c0_i32 = arith.constant 0 : i32
    %c0_i32_0 = arith.constant 0 : i32
    return %arg1, %c0_i32 : i32, i32
  }
  func.func @transform_1(%arg0: i32, %arg1: i32) -> (i32, i32) {
    %c0_i32 = arith.constant 0 : i32
    %c0_i32_0 = arith.constant 0 : i32
    return %c0_i32, %arg0 : i32, i32
  }
  func.func @transform_2(%arg0: i32, %arg1: i32) -> (i32, i32) {
    %c0_i32 = arith.constant 0 : i32
    %c0_i32_0 = arith.constant 0 : i32
    return %c0_i32, %arg0 : i32, i32
  }
  func.func @transform_3(%arg0: i32, %arg1: i32) -> (i32, i32) {
    %c0_i32 = arith.constant 0 : i32
    return %arg1, %arg0 : i32, i32
  }
}

module attributes {stable_mosaic.version = 11 : i64} {
  func.func @_pooler_kernel(%arg0: i32, %arg1: i32, %arg2: memref<2x32xf32, #tpu.memory_space<vmem>>, %arg3: memref<32x128xbf16, #tpu.memory_space<vmem>>, %arg4: memref<1x128xf32, #tpu.memory_space<vmem>>, %arg5: memref<2x128xf32, #tpu.memory_space<vmem>>) attributes {dimension_semantics = [#tpu.dimension_semantics<parallel>, #tpu.dimension_semantics<parallel>], iteration_bounds = array<i64: 1, 1>, scalar_prefetch = 0 : i64, scratch_operands = 0 : i64, tpu.core_type = #tpu.core_type<tc>, window_params = [{transform_indices = @transform_0, window_bounds = array<i64: 2, 32>}, {transform_indices = @transform_1, window_bounds = array<i64: 32, 128>}, {transform_indices = @transform_2, window_bounds = array<i64: 1, 128>}, {transform_indices = @transform_3, window_bounds = array<i64: 2, 128>}]} {
    %c0 = arith.constant 0 : index
    %c0_0 = arith.constant 0 : index
    %0 = vector.load %arg2[%c0, %c0_0] : memref<2x32xf32, #tpu.memory_space<vmem>>, vector<2x32xf32>
    %1 = arith.truncf %0 : vector<2x32xf32> to vector<2x32xbf16>
    %c0_1 = arith.constant 0 : index
    %c0_2 = arith.constant 0 : index
    %2 = vector.load %arg3[%c0_1, %c0_2] : memref<32x128xbf16, #tpu.memory_space<vmem>>, vector<32x128xbf16>
    %cst = arith.constant dense<0.000000e+00> : vector<2x128xf32>
    %3 = tpu.matmul %1, %2, %cst {dimension_numbers = #tpu.dot_dimension_numbers<[1], [0], [0], [1], [0, 0, 1, 1], [], []>} : vector<2x32xbf16>, vector<32x128xbf16>, vector<2x128xf32> -> vector<2x128xf32>
    %c0_3 = arith.constant 0 : index
    %c0_4 = arith.constant 0 : index
    %4 = vector.load %arg4[%c0_3, %c0_4] : memref<1x128xf32, #tpu.memory_space<vmem>>, vector<1x128xf32>
    %5 = vector.broadcast %4 : vector<1x128xf32> to vector<2x128xf32>
    %6 = arith.addf %3, %5 : vector<2x128xf32>
    %7 = math.tanh %6 : vector<2x128xf32>
    %c0_5 = arith.constant 0 : index
    %c0_6 = arith.constant 0 : index
    %8 = vector.load %arg5[%c0_5, %c0_6] : memref<2x128xf32, #tpu.memory_space<vmem>>, vector<2x128xf32>
    tpu.vector_store %arg5[%c0_5, %c0_6], %7 {strides = array<i32>} : memref<2x128xf32, #tpu.memory_space<vmem>>, vector<2x128xf32>,
    return
  }
  func.func @transform_0(%arg0: i32, %arg1: i32) -> (i32, i32) {
    %c0_i32 = arith.constant 0 : i32
    %c0_i32_0 = arith.constant 0 : i32
    return %arg1, %c0_i32 : i32, i32
  }
  func.func @transform_1(%arg0: i32, %arg1: i32) -> (i32, i32) {
    %c0_i32 = arith.constant 0 : i32
    %c0_i32_0 = arith.constant 0 : i32
    return %c0_i32, %arg0 : i32, i32
  }
  func.func @transform_2(%arg0: i32, %arg1: i32) -> (i32, i32) {
    %c0_i32 = arith.constant 0 : i32
    %c0_i32_0 = arith.constant 0 : i32
    return %c0_i32, %arg0 : i32, i32
  }
  func.func @transform_3(%arg0: i32, %arg1: i32) -> (i32, i32) {
    %c0_i32 = arith.constant 0 : i32
    return %arg1, %arg0 : i32, i32
  }
}

</mosaic_0001>

<bundles_post_ra>
// kernel: tpu_custom_call.1
= control target key start
LH: loop header
LB: loop body
LE: loop exit
PB: predicated region body
PF: predicated region fallthrough
CT: control target
= control target key end

     0   :  { %8 = vsyncpa [#allocation3], 0  ;;  %s300_s0 = inlined_call_operand.hbm [shape: f32[2,32], index: 0, kind: input, shape index: {}]   ;;  %s301_s1 = inlined_call_operand.hbm [shape: bf16[32,128], index: 1, kind: input, shape index: {}]   ;;  %s302_s2 = inlined_call_operand.vmem [shape: f32[1,128], index: 2, kind: input, shape index: {}]   ;;  %s303_s3 = inlined_call_operand.hbm [shape: f32[2,128], index: 3, kind: output, shape index: {}]  }
   0x1   :  { %9 = vsyncpa [#allocation6], 0 }
   0x2   :  { %10 = vsyncpa [#allocation4], 0  ;;  %s227_s12 = smov [#allocation2]   ;;  %s228_s14 = smov [#allocation5]  }
   0x3   :  { %s17_s13 = sshll.u32 %s227_s12, 4  ;;  %s26_s15 = sshll.u32 %s228_s14, 4  ;;  %s18_s13 = int_to_ptr.vmem [resolvable:$true] %s17_s13  ;;  %s254_s15 = int_to_ptr.vmem [resolvable:$true] %s26_s15 }
   0x4   :  { %s155_s18 = scalar_lea.hbm %s300_s0, 32 }
   0x5   :  { %p156_p0 = scmp.ne.s32.totalorder %s300_s0, %s155_s18  ;;  %p159_p1 = scmp.lt.u32.totalorder %s155_s18, %s300_s0 }
   0x7   :  { %p161_p2 = pnand %p159_p1, %p156_p0 }
   0x9   :  { %164 = shalt.err (!%p161_p2)
}
   0xa   :  { %s165_s23 = scalar_lea.vmem %s18_s13, 32  ;;  %p170_p4 = scmp.lt.s32.totalorder %s18_s13, %s18_s13 }
   0xb   :  { %p166_p3 = scmp.ne.s32.totalorder %s18_s13, %s165_s23  ;;  %p171_p5 = scmp.lt.s32.totalorder %s165_s23, %s165_s23 }
   0xd   :  { %p172_p6 = por %p171_p5, %p170_p4 }
   0xf   :  { %p173_p7 = pnand %p172_p6, %p166_p3 }
  0x11   :  { %176 = shalt.err (!%p173_p7)
}
  0x12   :  { %20 = dma.hbm_to_vmem [thread:$0]  %s300_s0, 32, %s18_s13, [#allocation3]  }
  0x13   :  { %s177_s28 = scalar_lea.hbm %s301_s1, 256 }
  0x14   :  { %p178_p8 = scmp.ne.s32.totalorder %s301_s1, %s177_s28  ;;  %p181_p9 = scmp.lt.u32.totalorder %s177_s28, %s301_s1 }
  0x16   :  { %p183_p10 = pnand %p181_p9, %p178_p8 }
  0x18   :  { %186 = shalt.err (!%p183_p10)
}
  0x19   :  { %s187_s6 = scalar_lea.vmem %s254_s15, 256  ;;  %p192_p12 = scmp.lt.s32.totalorder %s254_s15, %s254_s15 }
  0x1a   :  { %p188_p11 = scmp.ne.s32.totalorder %s254_s15, %s187_s6  ;;  %p193_p13 = scmp.lt.s32.totalorder %s187_s6, %s187_s6 }
  0x1c   :  { %p194_p0 = por %p193_p13, %p192_p12 }
  0x1e   :  { %p195_p1 = pnand %p194_p0, %p188_p11 }
  0x20   :  { %198 = shalt.err (!%p195_p1)
}
  0x21   :  { %s229_s0 = smov 64   ;;  %s230_s7 = smov 4  }
  0x22   :  { %32 = dma.hbm_to_vmem [thread:$0]  %s301_s1, 256, %s254_s15, [#allocation6], %s229_s0, %s229_s0, %s230_s7  }
  0x23   :  { %221 = dma.done.wait [#allocation3], 32  }
  0x24   :  { %222 = vsyncadd [#allocation3], 4294967264 }
  0x25   :  { %223 = dma.done.wait [#allocation6], 256  }
  0x26   :  { %224 = vsyncadd [#allocation6], 4294967040  ;;  %v231_v0 = vmov 0.0   ;;  %vm232_vm0 = vmmov 0   ;;  %v151_v1 = vld [vmem:[#allocation5] sm:$0xff]   ;;  %v152_v2 = vld [vmem:[#allocation5 + $0x8] sm:$0xff]  }
  0x27   :  { %136 = vmatprep.subr.bf16.mxu0 %v231_v0  ;;  %140 = vmatprep.mubr.msk.bf16.mxu0 %vm232_vm0, %v231_v0  ;;  %v42_v3 = vld [vmem:[#allocation2] sm:$0x3]  ;;  %vm67_vm1 = vcmask 261120   ;;  %s233_s1 = smov [#allocation7]  }
  0x28   :  { %137 = vmatpush3.bf16.msra.mxu0 %v151_v1  ;;  %v43_v4 = vpack.c.bf16 %v42_v3, %v42_v3  ;;  %v129_v5 = vld [vmem:[%s302_s2] ss:$0 sm:$0xff]  ;;  %s119_s12 = sshll.u32 %s233_s1, 4  ;;  %s120_s12 = int_to_ptr.vmem [resolvable:$true] %s119_s12 }
  0x29   :  { %138 = vmatprep.subr.bf16.mxu0 %v231_v0  ;;  %s199_s13 = scalar_lea.vmem %s120_s12, 32  ;;  %p204_p3 = scmp.lt.s32.totalorder %s120_s12, %s120_s12 }
  0x2a   :  { %p200_p2 = scmp.ne.s32.totalorder %s120_s12, %s199_s13  ;;  %p205_p4 = scmp.lt.s32.totalorder %s199_s13, %s199_s13 }
  0x2c   :  { %139 = vmatpush3.bf16.msra.mxu0 %v152_v2  ;;  %p206_p5 = por %p205_p4, %p204_p3 }
  0x2e   :  { %p207_p6 = pnand %p206_p5, %p200_p2 }
  0x2f   :  { %141 = vmatmul.mubr.msk.bf16.vlgmr.msra.gmra.mrb[0].mxu0 %vm67_vm1, %v43_v4 }
 0x102   :  { %v105_v6 = vpop.f32.mrb[0].mxu0 }
 0x103   :  { %v106_v7 = vadd.f32 %v129_v5, %v105_v6  ;;  %v142_v8 = vpop.f32.mrb[1].mxu0 }
 0x104   :  { %v108_v9 = vpop.f32.mrb[2].mxu0 }
 0x105   :  { %153 = vtanh.f32 %v106_v7  ;;  %v143_v10 = vpop.f32.mrb[3].mxu0 }
 0x10f   :  { %v154_v11 = vpop.eup %153 }
 0x110   :  { %112 = vst [vmem:[#allocation7] sm:$0x3] %v154_v11 }
 0x111   :  { %210 = shalt.err (!%p207_p6)
}
 0x112   :  { %s211_s15 = scalar_lea.hbm %s303_s3, 32 }
 0x113   :  { %p212_p7 = scmp.ne.s32.totalorder %s303_s3, %s211_s15  ;;  %p215_p8 = scmp.lt.u32.totalorder %s211_s15, %s303_s3 }
 0x115   :  { %p217_p9 = pnand %p215_p8, %p212_p7 }
 0x117   :  { %220 = shalt.err (!%p217_p9)
}
 0x118   :  { %122 = dma.vmem_to_hbm [thread:$0]  %s120_s12, 32, %s303_s3, [#allocation4]  }
 0x119   :  { %225 = dma.done.wait [#allocation4], 32  }
 0x11a   :  { %226 = vsyncadd [#allocation4], 4294967264 }
 0x11b   :  { %126 = vsyncpa [#allocation3], 1 }
 0x11c   :  { %127 = vsyncpa [#allocation6], 1 }
 0x11d   :  { %128 = vsyncpa [#allocation4], 1 }

// kernel: tpu_custom_call.1
= control target key start
LH: loop header
LB: loop body
LE: loop exit
PB: predicated region body
PF: predicated region fallthrough
CT: control target
= control target key end

     0   :  { %8 = vsyncpa [#allocation3], 0  ;;  %s300_s0 = inlined_call_operand.hbm [shape: f32[2,32], index: 0, kind: input, shape index: {}]   ;;  %s301_s1 = inlined_call_operand.hbm [shape: bf16[32,128], index: 1, kind: input, shape index: {}]   ;;  %s302_s2 = inlined_call_operand.vmem [shape: f32[1,128], index: 2, kind: input, shape index: {}]   ;;  %s303_s3 = inlined_call_operand.hbm [shape: f32[2,128], index: 3, kind: output, shape index: {}]  }
   0x1   :  { %9 = vsyncpa [#allocation6], 0 }
   0x2   :  { %10 = vsyncpa [#allocation4], 0  ;;  %s227_s12 = smov [#allocation2]   ;;  %s228_s14 = smov [#allocation5]  }
   0x3   :  { %s17_s13 = sshll.u32 %s227_s12, 4  ;;  %s26_s15 = sshll.u32 %s228_s14, 4  ;;  %s18_s13 = int_to_ptr.vmem [resolvable:$true] %s17_s13  ;;  %s254_s15 = int_to_ptr.vmem [resolvable:$true] %s26_s15 }
   0x4   :  { %s155_s18 = scalar_lea.hbm %s300_s0, 32 }
   0x5   :  { %p156_p0 = scmp.ne.s32.totalorder %s300_s0, %s155_s18  ;;  %p159_p1 = scmp.lt.u32.totalorder %s155_s18, %s300_s0 }
   0x7   :  { %p161_p2 = pnand %p159_p1, %p156_p0 }
   0x9   :  { %164 = shalt.err (!%p161_p2)
}
   0xa   :  { %s165_s23 = scalar_lea.vmem %s18_s13, 32  ;;  %p170_p4 = scmp.lt.s32.totalorder %s18_s13, %s18_s13 }
   0xb   :  { %p166_p3 = scmp.ne.s32.totalorder %s18_s13, %s165_s23  ;;  %p171_p5 = scmp.lt.s32.totalorder %s165_s23, %s165_s23 }
   0xd   :  { %p172_p6 = por %p171_p5, %p170_p4 }
   0xf   :  { %p173_p7 = pnand %p172_p6, %p166_p3 }
  0x11   :  { %176 = shalt.err (!%p173_p7)
}
  0x12   :  { %20 = dma.hbm_to_vmem [thread:$0]  %s300_s0, 32, %s18_s13, [#allocation3]  }
  0x13   :  { %s177_s28 = scalar_lea.hbm %s301_s1, 256 }
  0x14   :  { %p178_p8 = scmp.ne.s32.totalorder %s301_s1, %s177_s28  ;;  %p181_p9 = scmp.lt.u32.totalorder %s177_s28, %s301_s1 }
  0x16   :  { %p183_p10 = pnand %p181_p9, %p178_p8 }
  0x18   :  { %186 = shalt.err (!%p183_p10)
}
  0x19   :  { %s187_s6 = scalar_lea.vmem %s254_s15, 256  ;;  %p192_p12 = scmp.lt.s32.totalorder %s254_s15, %s254_s15 }
  0x1a   :  { %p188_p11 = scmp.ne.s32.totalorder %s254_s15, %s187_s6  ;;  %p193_p13 = scmp.lt.s32.totalorder %s187_s6, %s187_s6 }
  0x1c   :  { %p194_p0 = por %p193_p13, %p192_p12 }
  0x1e   :  { %p195_p1 = pnand %p194_p0, %p188_p11 }
  0x20   :  { %198 = shalt.err (!%p195_p1)
}
  0x21   :  { %s229_s0 = smov 64   ;;  %s230_s7 = smov 4  }
  0x22   :  { %32 = dma.hbm_to_vmem [thread:$0]  %s301_s1, 256, %s254_s15, [#allocation6], %s229_s0, %s229_s0, %s230_s7  }
  0x23   :  { %221 = dma.done.wait [#allocation3], 32  }
  0x24   :  { %222 = vsyncadd [#allocation3], 4294967264 }
  0x25   :  { %223 = dma.done.wait [#allocation6], 256  }
  0x26   :  { %224 = vsyncadd [#allocation6], 4294967040  ;;  %v231_v0 = vmov 0.0   ;;  %vm232_vm0 = vmmov 0   ;;  %v151_v1 = vld [vmem:[#allocation5] sm:$0xff]   ;;  %v152_v2 = vld [vmem:[#allocation5 + $0x8] sm:$0xff]  }
  0x27   :  { %136 = vmatprep.subr.bf16.mxu0 %v231_v0  ;;  %140 = vmatprep.mubr.msk.bf16.mxu0 %vm232_vm0, %v231_v0  ;;  %v42_v3 = vld [vmem:[#allocation2] sm:$0x3]  ;;  %vm67_vm1 = vcmask 261120   ;;  %s233_s1 = smov [#allocation7]  }
  0x28   :  { %137 = vmatpush3.bf16.msra.mxu0 %v151_v1  ;;  %v43_v4 = vpack.c.bf16 %v42_v3, %v42_v3  ;;  %v129_v5 = vld [vmem:[%s302_s2] ss:$0 sm:$0xff]  ;;  %s119_s12 = sshll.u32 %s233_s1, 4  ;;  %s120_s12 = int_to_ptr.vmem [resolvable:$true] %s119_s12 }
  0x29   :  { %138 = vmatprep.subr.bf16.mxu0 %v231_v0  ;;  %s199_s13 = scalar_lea.vmem %s120_s12, 32  ;;  %p204_p3 = scmp.lt.s32.totalorder %s120_s12, %s120_s12 }
  0x2a   :  { %p200_p2 = scmp.ne.s32.totalorder %s120_s12, %s199_s13  ;;  %p205_p4 = scmp.lt.s32.totalorder %s199_s13, %s199_s13 }
  0x2c   :  { %139 = vmatpush3.bf16.msra.mxu0 %v152_v2  ;;  %p206_p5 = por %p205_p4, %p204_p3 }
  0x2e   :  { %p207_p6 = pnand %p206_p5, %p200_p2 }
  0x2f   :  { %141 = vmatmul.mubr.msk.bf16.vlgmr.msra.gmra.mrb[0].mxu0 %vm67_vm1, %v43_v4 }
 0x102   :  { %v105_v6 = vpop.f32.mrb[0].mxu0 }
 0x103   :  { %v106_v7 = vadd.f32 %v129_v5, %v105_v6  ;;  %v142_v8 = vpop.f32.mrb[1].mxu0 }
 0x104   :  { %v108_v9 = vpop.f32.mrb[2].mxu0 }
 0x105   :  { %153 = vtanh.f32 %v106_v7  ;;  %v143_v10 = vpop.f32.mrb[3].mxu0 }
 0x10f   :  { %v154_v11 = vpop.eup %153 }
 0x110   :  { %112 = vst [vmem:[#allocation7] sm:$0x3] %v154_v11 }
 0x111   :  { %210 = shalt.err (!%p207_p6)
}
 0x112   :  { %s211_s15 = scalar_lea.hbm %s303_s3, 32 }
 0x113   :  { %p212_p7 = scmp.ne.s32.totalorder %s303_s3, %s211_s15  ;;  %p215_p8 = scmp.lt.u32.totalorder %s211_s15, %s303_s3 }
 0x115   :  { %p217_p9 = pnand %p215_p8, %p212_p7 }
 0x117   :  { %220 = shalt.err (!%p217_p9)
}
 0x118   :  { %122 = dma.vmem_to_hbm [thread:$0]  %s120_s12, 32, %s303_s3, [#allocation4]  }
 0x119   :  { %225 = dma.done.wait [#allocation4], 32  }
 0x11a   :  { %226 = vsyncadd [#allocation4], 4294967264 }
 0x11b   :  { %126 = vsyncpa [#allocation3], 1 }
 0x11c   :  { %127 = vsyncpa [#allocation6], 1 }
 0x11d   :  { %128 = vsyncpa [#allocation4], 1 }

</bundles_post_ra>
